<compile_context>
chip_gen: v5e
topology: v5e:2x2
jax: 0.10.0
libtpu: 0.0.40
codegen_flags: <defaults>
</compile_context>

<pallas_src>
import jax
import jax.numpy as jnp
from jax.experimental import pallas as pl
from jax.experimental.pallas import tpu as pltpu

BN_EPS = 1e-5  # PyTorch BatchNorm2d default

# Set to jnp.bfloat16 to halve HBM/VMEM traffic and feed the MXU at native bf16
# rate (accumulation stays f32).  Default f32 to stay well inside the 2e-3
# verification tolerance of the reference check.
MATMUL_DTYPE = jnp.float32

VMEM_LIMIT_BYTES = 48 * 1024 * 1024   # explicit scoped-VMEM request; safe on v7x (64 MiB)
VMEM_TILE_BUDGET = 24 * 1024 * 1024   # target double-buffered working set for P tiles


# ----------------------------------------------------------------------------
# Pallas kernels: single-matmul conv + folded BN affine + ReLU (+ fused residual)
# ----------------------------------------------------------------------------
def _make_fused_kernel(has_residual):
    if has_residual:
        def kernel(taps_ref, w_ref, scale_ref, shift_ref, r_ref, wr_ref, br_ref, o_ref):
            # conv as ONE MXU contraction: (Cout, K) @ (K, TP) -> (Cout, TP)
            acc = jnp.dot(w_ref[...], taps_ref[...],
                          preferred_element_type=jnp.float32)
            # folded (conv-bias + BatchNorm) affine, broadcast along lanes, + ReLU
            y = jnp.maximum(acc * scale_ref[...] + shift_ref[...], 0.0)
            # residual path fused as a (small) 1x1-conv matmul; identity residual
            # is expressed with wr = I, br = 0 (exact in f32).
            res = jnp.dot(wr_ref[...], r_ref[...],
                          preferred_element_type=jnp.float32) + br_ref[...]
            o_ref[...] = (y + res).astype(o_ref.dtype)
    else:
        def kernel(taps_ref, w_ref, scale_ref, shift_ref, o_ref):
            acc = jnp.dot(w_ref[...], taps_ref[...],
                          preferred_element_type=jnp.float32)
            y = jnp.maximum(acc * scale_ref[...] + shift_ref[...], 0.0)
            o_ref[...] = y.astype(o_ref.dtype)
    return kernel


def _choose_tile_p(p, bytes_per_col):
    """Largest pixel tile (multiple of 256 preferred, 128 min) that divides P and
    keeps the double-buffered working set under the VMEM budget."""
    for tp in (2048, 1024, 512, 256, 128):
        if p % tp == 0 and 2 * tp * bytes_per_col <= VMEM_TILE_BUDGET:
            return tp
    return p  # tiny inputs: one full-P block per batch element


def fused_conv_bn_relu(taps, w2d, scale, shift, residual=None, *, out_dtype=jnp.float32):
    """out = relu((w2d @ taps) * scale + shift) [ + (wr @ r + br) ]  per batch element.

    taps:     (N, K, P)   im2col'd input, K = taps*Cin, P = Hout*Wout (lane axis)
    w2d:      (Cout, K)
    scale:    (Cout, 1)   folded BN scale
    shift:    (Cout, 1)   folded conv-bias + BN shift
    residual: optional (r, wr, br): r (N, Cr, P), wr (Cout, Cr), br (Cout, 1)
    returns   (N, Cout, P) in out_dtype.
    """
    n, k, p = taps.shape
    cout = w2d.shape[0]

    taps = taps.astype(MATMUL_DTYPE)
    w2d = w2d.astype(MATMUL_DTYPE)
    scale = scale.astype(jnp.float32)
    shift = shift.astype(jnp.float32)

    itemsize = jnp.dtype(MATMUL_DTYPE).itemsize
    bytes_per_col = k * itemsize + cout * jnp.dtype(out_dtype).itemsize

    if residual is not None:
        r, wr, br = residual
        cr = r.shape[1]
        r = r.astype(MATMUL_DTYPE)
        wr = wr.astype(MATMUL_DTYPE)
        br = br.astype(jnp.float32)
        bytes_per_col += cr * itemsize

    tp = _choose_tile_p(p, bytes_per_col)
    grid = (n, p // tp)

    in_specs = [
        pl.BlockSpec((pl.Squeezed(), k, tp), lambda ni, pi: (ni, 0, pi)),
        pl.BlockSpec((cout, k), lambda ni, pi: (0, 0)),
        pl.BlockSpec((cout, 1), lambda ni, pi: (0, 0)),
        pl.BlockSpec((cout, 1), lambda ni, pi: (0, 0)),
    ]
    inputs = [taps, w2d, scale, shift]
    if residual is not None:
        in_specs += [
            pl.BlockSpec((pl.Squeezed(), cr, tp), lambda ni, pi: (ni, 0, pi)),
            pl.BlockSpec((cout, cr), lambda ni, pi: (0, 0)),
            pl.BlockSpec((cout, 1), lambda ni, pi: (0, 0)),
        ]
        inputs += [r, wr, br]

    return pl.pallas_call(
        _make_fused_kernel(residual is not None),
        out_shape=jax.ShapeDtypeStruct((n, cout, p), out_dtype),
        grid_spec=pltpu.PrefetchScalarGridSpec(
            num_scalar_prefetch=0,
            grid=grid,
            in_specs=in_specs,
            out_specs=pl.BlockSpec((pl.Squeezed(), cout, tp), lambda ni, pi: (ni, 0, pi)),
        ),
        compiler_params=pltpu.CompilerParams(
            dimension_semantics=("parallel", "parallel"),
            vmem_limit_bytes=VMEM_LIMIT_BYTES,
        ),
    )(*inputs)


# ----------------------------------------------------------------------------
# Plain-JAX glue: layout prep + parameter folding
# ----------------------------------------------------------------------------
def _extract_taps_nchw(x, ksize, stride, padding):
    """im2col on NCHW: returns (N, ksize*ksize*C, Hout*Wout), Hout, Wout."""
    n, c, h, w = x.shape
    hp, wp = h + 2 * padding, w + 2 * padding
    h_out = (hp - ksize) // stride + 1
    w_out = (wp - ksize) // stride + 1
    xp = jnp.pad(x, ((0, 0), (0, 0), (padding, padding), (padding, padding)))
    taps = []
    for kh in range(ksize):
        for kw in range(ksize):
            taps.append(xp[:, :,
                           kh: kh + stride * (h_out - 1) + 1: stride,
                           kw: kw + stride * (w_out - 1) + 1: stride])
    t = jnp.stack(taps, axis=1)  # (N, T, C, Hout, Wout)
    return t.reshape(n, ksize * ksize * c, h_out * w_out), h_out, w_out


def _fold_conv_bn(conv_bias, bn_params):
    gamma, beta, mean, var = bn_params
    scale = gamma / jnp.sqrt(var + BN_EPS)
    shift = (conv_bias - mean) * scale + beta
    return (scale.reshape(-1, 1).astype(jnp.float32),
            shift.reshape(-1, 1).astype(jnp.float32))


def block_forward(x_nchw, params, downsample):
    """Pallas implementation of Block.forward.  Input/output are NCHW."""
    x = x_nchw.astype(jnp.float32)
    n, cin, h, w = x.shape
    cout = params["w1"].shape[0]
    stride = 2 if downsample else 1

    # ---- conv1 (3x3, stride 1|2, pad 1) + BN1 + ReLU -------------------------
    taps1, h1, w1 = _extract_taps_nchw(x, 3, stride, 1)            # (N, 9*Cin, P1)
    w1k = jnp.transpose(params["w1"], (0, 2, 3, 1)).reshape(cout, 9 * cin)
    scale1, shift1 = _fold_conv_bn(params["b1"], params["bn1"])
    y1 = fused_conv_bn_relu(taps1, w1k, scale1, shift1,
                            out_dtype=MATMUL_DTYPE)                # (N, Cout, P1)

    # ---- residual path (fused into conv2 kernel as a 1x1-conv matmul) --------
    p1 = h1 * w1
    if downsample:
        r = x[:, :, ::2, ::2].reshape(n, cin, p1)                  # 1x1 stride-2 sampling
        wr = params["wr"].reshape(cout, cin)
        br = params["br"].reshape(cout, 1)
    else:
        assert cin == cout, "identity residual requires in_channels == out_channels"
        r = x.reshape(n, cin, p1)
        wr = jnp.eye(cout, dtype=jnp.float32)                      # identity as 1x1 conv
        br = jnp.zeros((cout, 1), jnp.float32)

    # ---- conv2 (3x3, stride 1, pad 1) + BN2 + ReLU + residual add ------------
    y1_img = y1.reshape(n, cout, h1, w1)
    taps2, _, _ = _extract_taps_nchw(y1_img, 3, 1, 1)              # (N, 9*Cout, P1)
    w2k = jnp.transpose(params["w2"], (0, 2, 3, 1)).reshape(cout, 9 * cout)
    scale2, shift2 = _fold_conv_bn(params["b2"], params["bn2"])
    out = fused_conv_bn_relu(taps2, w2k, scale2, shift2,
                             residual=(r, wr, br),
                             out_dtype=jnp.float32)                # (N, Cout, P1)

    return out.reshape(n, cout, h1, w1)                            # already NCHW


# ----------------------------------------------------------------------------
# Deterministic synthetic parameters (shapes match the nn.Module __init__)
# ----------------------------------------------------------------------------
def init_params(key, cin, cout, downsample):
    ks = jax.random.split(key, 16)

    def bn(k0, k1, k2, k3):
        return (jax.random.normal(k0, (cout,), jnp.float32) * 0.1 + 1.0,   # gamma
                jax.random.normal(k1, (cout,), jnp.float32) * 0.1,          # beta
                jax.random.normal(k2, (cout,), jnp.float32) * 0.1,          # running_mean
                jax.nn.softplus(jax.random.normal(k3, (cout,), jnp.float32)) + 0.5)  # running_var

    params = {
        "w1": jax.random.normal(ks[0], (cout, cin, 3, 3), jnp.float32) * 0.1,
        "b1": jax.random.normal(ks[1], (cout,), jnp.float32) * 0.1,
        "bn1": bn(ks[2], ks[3], ks[4], ks[5]),
        "w2": jax.random.normal(ks[6], (cout, cout, 3, 3), jnp.float32) * 0.1,
        "b2": jax.random.normal(ks[7], (cout,), jnp.float32) * 0.1,
        "bn2": bn(ks[8], ks[9], ks[10], ks[11]),
    }
    if downsample:
        params["wr"] = jax.random.normal(ks[12], (cout, cin, 1, 1), jnp.float32) * 0.1
        params["br"] = jax.random.normal(ks[13], (cout,), jnp.float32) * 0.1
    return params


# ----------------------------------------------------------------------------
# Pure-JAX reference (for correctness check only)
# ----------------------------------------------------------------------------
def ref_forward(x, params, downsample):
    def conv(x, w, b, stride, pad):
        y = jax.lax.conv_general_dilated(
            x, w, (stride, stride), [(pad, pad), (pad, pad)],
            dimension_numbers=("NCHW", "OIHW", "NCHW"))
        return y + b.reshape(1, -1, 1, 1)

    def bn(z, p):
        g, bt, m, v = p
        g, bt, m, v = (a.reshape(1, -1, 1, 1) for a in (g, bt, m, v))
        return g * (z - m) / jnp.sqrt(v + BN_EPS) + bt

    stride = 2 if downsample else 1
    residual = conv(x, params["wr"], params["br"], 2, 0) if downsample else x
    h = jax.nn.relu(bn(conv(x, params["w1"], params["b1"], stride, 1), params["bn1"]))
    h = jax.nn.relu(bn(conv(h, params["w2"], params["b2"], 1, 1), params["bn2"]))
    return h + residual


# ----------------------------------------------------------------------------
if __name__ == "__main__":
    key = jax.random.PRNGKey(0)
    k_x1, k_p1, k_x2, k_p2 = jax.random.split(key, 4)

    # Case 1: downsample block (in=4 -> out=8, spatial 16 -> 8)
    N, Cin, H, W, Cout = 2, 4, 16, 16, 8
    x1 = jax.random.normal(k_x1, (N, Cin, H, W), jnp.float32)
    p1 = init_params(k_p1, Cin, Cout, downsample=True)
    y1 = block_forward(x1, p1, downsample=True)
    r1 = ref_forward(x1, p1, downsample=True)

    # Case 2: identity-residual block (in=out=8, spatial preserved)
    x2 = jax.random.normal(k_x2, (N, Cout, H, W), jnp.float32)
    p2 = init_params(k_p2, Cout, Cout, downsample=False)
    y2 = block_forward(x2, p2, downsample=False)
    r2 = ref_forward(x2, p2, downsample=False)

    jax.block_until_ready((y1, y2))

    assert y1.shape == (N, Cout, H // 2, W // 2), y1.shape
    assert y2.shape == (N, Cout, H, W), y2.shape
    assert jnp.allclose(y1, r1, atol=2e-3, rtol=2e-3), float(jnp.abs(y1 - r1).max())
    assert jnp.allclose(y2, r2, atol=2e-3, rtol=2e-3), float(jnp.abs(y2 - r2).max())

    print("KERNEL_OK")
</pallas_src>

<mosaic_0001>
module attributes {stable_mosaic.version = 11 : i64} {
  func.func @kernel(%arg0: i32, %arg1: i32, %arg2: memref<1x36x64xf32, #tpu.memory_space<vmem>>, %arg3: memref<8x36xf32, #tpu.memory_space<vmem>>, %arg4: memref<8x1xf32, #tpu.memory_space<vmem>>, %arg5: memref<8x1xf32, #tpu.memory_space<vmem>>, %arg6: memref<1x8x64xf32, #tpu.memory_space<vmem>>) attributes {dimension_semantics = [#tpu.dimension_semantics<parallel>, #tpu.dimension_semantics<parallel>], iteration_bounds = array<i64: 2, 1>, scalar_prefetch = 0 : i64, scratch_operands = 0 : i64, tpu.core_type = #tpu.core_type<tc>, window_params = [{transform_indices = @transform_0, window_bounds = array<i64: 1, 36, 64>}, {pipeline_mode = #tpu.pipeline_mode<synchronous>, transform_indices = @transform_1, window_bounds = array<i64: 8, 36>}, {pipeline_mode = #tpu.pipeline_mode<synchronous>, transform_indices = @transform_2, window_bounds = array<i64: 8, 1>}, {pipeline_mode = #tpu.pipeline_mode<synchronous>, transform_indices = @transform_3, window_bounds = array<i64: 8, 1>}, {transform_indices = @transform_4, window_bounds = array<i64: 1, 8, 64>}]} {
    %c0 = arith.constant 0 : index
    %c0_0 = arith.constant 0 : index
    %0 = vector.load %arg3[%c0, %c0_0] : memref<8x36xf32, #tpu.memory_space<vmem>>, vector<8x36xf32>
    %c0_1 = arith.constant 0 : index
    %c0_2 = arith.constant 0 : index
    %c0_3 = arith.constant 0 : index
    %1 = vector.load %arg2[%c0_1, %c0_2, %c0_3] : memref<1x36x64xf32, #tpu.memory_space<vmem>>, vector<1x36x64xf32>
    %2 = vector.shape_cast %1 : vector<1x36x64xf32> to vector<36x64xf32>
    %cst = arith.constant dense<0.000000e+00> : vector<8x64xf32>
    %3 = tpu.matmul %0, %2, %cst {dimension_numbers = #tpu.dot_dimension_numbers<[1], [0], [0], [1], [0, 0, 1, 1], [], []>} : vector<8x36xf32>, vector<36x64xf32>, vector<8x64xf32> -> vector<8x64xf32>
    %c0_4 = arith.constant 0 : index
    %c0_5 = arith.constant 0 : index
    %4 = vector.load %arg4[%c0_4, %c0_5] : memref<8x1xf32, #tpu.memory_space<vmem>>, vector<8x1xf32>
    %5 = vector.broadcast %4 : vector<8x1xf32> to vector<8x64xf32>
    %6 = arith.mulf %3, %5 : vector<8x64xf32>
    %c0_6 = arith.constant 0 : index
    %c0_7 = arith.constant 0 : index
    %7 = vector.load %arg5[%c0_6, %c0_7] : memref<8x1xf32, #tpu.memory_space<vmem>>, vector<8x1xf32>
    %8 = vector.broadcast %7 : vector<8x1xf32> to vector<8x64xf32>
    %9 = arith.addf %6, %8 : vector<8x64xf32>
    %cst_8 = arith.constant 0.000000e+00 : f32
    %10 = vector.broadcast %cst_8 : f32 to vector<8x64xf32>
    %11 = arith.maximumf %9, %10 : vector<8x64xf32>
    %c0_9 = arith.constant 0 : index
    %c0_10 = arith.constant 0 : index
    %c0_11 = arith.constant 0 : index
    %12 = vector.load %arg6[%c0_9, %c0_10, %c0_11] : memref<1x8x64xf32, #tpu.memory_space<vmem>>, vector<1x8x64xf32>
    %13 = vector.shape_cast %12 : vector<1x8x64xf32> to vector<8x64xf32>
    %14 = vector.shape_cast %11 : vector<8x64xf32> to vector<1x8x64xf32>
    tpu.vector_store %arg6[%c0_9, %c0_10, %c0_11], %14 {strides = array<i32>} : memref<1x8x64xf32, #tpu.memory_space<vmem>>, vector<1x8x64xf32>,
    return
  }
  func.func @transform_0(%arg0: i32, %arg1: i32) -> (i32, i32, i32) {
    %c0_i32 = arith.constant 0 : i32
    %c0_i32_0 = arith.constant 0 : i32
    return %arg0, %c0_i32, %arg1 : i32, i32, i32
  }
  func.func @transform_1(%arg0: i32, %arg1: i32) -> (i32, i32) {
    %c0_i32 = arith.constant 0 : i32
    %c0_i32_0 = arith.constant 0 : i32
    %c0_i32_1 = arith.constant 0 : i32
    return %c0_i32, %c0_i32_0 : i32, i32
  }
  func.func @transform_2(%arg0: i32, %arg1: i32) -> (i32, i32) {
    %c0_i32 = arith.constant 0 : i32
    %c0_i32_0 = arith.constant 0 : i32
    %c0_i32_1 = arith.constant 0 : i32
    return %c0_i32, %c0_i32_0 : i32, i32
  }
  func.func @transform_3(%arg0: i32, %arg1: i32) -> (i32, i32) {
    %c0_i32 = arith.constant 0 : i32
    %c0_i32_0 = arith.constant 0 : i32
    %c0_i32_1 = arith.constant 0 : i32
    return %c0_i32, %c0_i32_0 : i32, i32
  }
  func.func @transform_4(%arg0: i32, %arg1: i32) -> (i32, i32, i32) {
    %c0_i32 = arith.constant 0 : i32
    %c0_i32_0 = arith.constant 0 : i32
    return %arg0, %c0_i32, %arg1 : i32, i32, i32
  }
}

</mosaic_0001>

<bundles_post_ra>
// kernel: tpu_custom_call.1
= control target key start
LH: loop header
LB: loop body
LE: loop exit
PB: predicated region body
PF: predicated region fallthrough
CT: control target
= control target key end

     0   :  { %9 = vsyncpa [#allocation3], 0  ;;  %s646_s0 = inlined_call_operand.vmem [shape: f32[2,36,64], index: 0, kind: input, shape index: {}]   ;;  %s647_s1 = inlined_call_operand.vmem [shape: f32[8,36], index: 1, kind: input, shape index: {}]   ;;  %s648_s2 = inlined_call_operand.vmem [shape: f32[8,1], index: 2, kind: input, shape index: {}]   ;;  %s649_s3 = inlined_call_operand.vmem [shape: f32[8,1], index: 3, kind: input, shape index: {}]   ;;  %s650_s4 = inlined_call_operand.hbm [shape: f32[2,8,64], index: 4, kind: output, shape index: {}]  }
   0x1   :  { %11 = vsyncpa [#allocation3 + $0x1], 0  ;;  %s540_s15 = smov 0   ;;  %s542_s16 = smov 0  }
   0x2   :  { %s544_s17 = smov 0   ;;  %s546_s18 = smov 0  }
   0x3   :  { %s548_s19 = smov 0   ;;  %s550_s20 = smov 0  }
   0x4 LB: > { %s363_s21 = sadd.s32 4294967295, %s512_s20   ;;  %s364_s22 = sadd.s32 4294967294, %s512_s20   ;;  %s512_s20 = sphi %s550_s20, %s17_s20   ;;  %s508_s19 = sphi %s548_s19, %s657_s19   ;;  %s504_s18 = sphi %s546_s18, %s656_s18   ;;  %s500_s17 = sphi %s544_s17, %s655_s17   ;;  %s496_s16 = sphi %s542_s16, %s654_s16   ;;  %s492_s15 = sphi %s540_s15, %s653_s15  }
   0x5   : > { %s29_s23 = sadd.s32 1, %s508_s19  ;;  %s129_s24 = sadd.s32 1, %s500_s17 }
   0x6   : > { %p31_p0 = scmp.ge.s32.totalorder %s29_s23, 2  ;;  %p139_p1 = scmp.ne.s32.totalorder %s500_s17, %s496_s16 }
   0x7   : > { %p140_p2 = scmp.eq.s32.totalorder %s363_s21, 1  ;;  %p145_p3 = scmp.ne.s32.totalorder %s496_s16, %s492_s15 }
   0x8   : > { %s659_s23 = smov (%p31_p0, %s29_s23), 0  ;;  %p146_p5 = scmp.eq.s32.totalorder %s364_s22, 1 }
   0x9   : > { %p580_p4 = por %p140_p2, %p139_p1  ;;  %s124_s26 = ssub.s32 %s508_s19, %s659_s23 }
   0xa   : > { %p367_p6 = scmp.ge.s32.totalorder %s512_s20, 1  ;;  %p127_p7 = scmp.eq.s32.totalorder %s124_s26, 0 }
   0xb   : > { %p587_p8 = por %p146_p5, %p145_p3  ;;  %p184_p9 = scmp.lt.s32.totalorder %s512_s20, 3 }
   0xc   : > { %s593_s28 = scalar_select %p127_p7, %s500_s17, %s129_s24  }
   0xd   : > { %p185_p10 = pnand %p367_p6, %p184_p9 }
   0xe   : > { %p213_p11 = scmp.lt.s32.totalorder (!%p185_p10), %s504_s18, 1  ;;  %s210_s14 = sand.u32 (!%p185_p10), 1, %s496_s16  }
   0xf   : > { %188 = sbr.rel (%p185_p10) target bundleno = 170 (0xaa), region = 36  ;;  %s368_s21 = sshll.u32 (!%p185_p10), %s210_s14, 3 }
  0x10   : > { %s373_s22 = sshll.u32 (!%p185_p10), %s504_s18, 3  ;;  %s212_s30 = scalar_lea.vmem (!%p185_p10), [#allocation2], %s368_s21 }
  0x11   : > { %s284_s29 = scalar_lea.hbm (!%p185_p10), %s650_s4, %s373_s22  ;;  %s273_s7 = scalar_lea.sflag (!%p185_p10), [#allocation3], %s210_s14 }
  0x12   : > { %s454_s11 = scalar_lea.hbm (!%p185_p10), %s650_s4, 16 }
  0x14   : > { %v255_v0 = vld [vmem:[%s648_s2] sm:$0xff]  ;;  %v514_v1 = vmov 0   ;;  %s214_s5 = scalar_select %p213_p11, %s504_s18, 1  ;;  %vm231_vm0 = vcmask 1043456   ;;  %vm227_vm1 = vcmask 293888   ;;  %vm270_vm2 = vcmask 523264  }
  0x15   : > { %433 = vset.pattern.permute.xlu0 %v514_v1  ;;  %v262_v4 = vld [vmem:[%s649_s3] sm:$0xff] }
  0x16   : > { %258 = vperm.xlu0 %433, %v255_v0   ;;  %s376_s6 = smul.u32 40, %s214_s5  ;;  %v221_v8 = vld [vmem:[%s647_s1] sm:$0xff]  ;;  %s286_s5 = sshll.u32 %s212_s30, 4  ;;  %s287_s5 = int_to_ptr.vmem [resolvable:$true] %s286_s5 }
  0x18   : > { %s220_s9 = scalar_lea.vmem %s646_s0, %s376_s6  ;;  %s288_s6 = sshll.u32 %s284_s29, 4  ;;  %s289_s6 = int_to_ptr.hbm [resolvable:$true] %s288_s6 }
  0x19   : > { %v226_v2 = vld [vmem:[%s220_s9 + $0x20] sm:$0xf]  ;;  %v225_v3 = vld [vmem:[%s220_s9 + $0x18] sm:$0xff]  ;;  %v224_v5 = vld [vmem:[%s220_s9 + $0x10] sm:$0xff]  ;;  %s448_s8 = sshra.s32 %s289_s6, 4  ;;  %s449_s8 = int_to_ptr.hbm [resolvable:$true] %s448_s8 }
  0x1a   : > { %370 = vmatpush.msk.msra.mxu0 %vm231_vm0, %v226_v2  ;;  %v223_v6 = vld [vmem:[%s220_s9 + $0x8] sm:$0xff]  ;;  %v222_v7 = vld [vmem:[%s220_s9] sm:$0xff]  ;;  %s450_s18 = scalar_lea.hbm %s449_s8, 8  ;;  %p455_p1 = scmp.lt.s32.totalorder %s449_s8, %s650_s4 }
  0x1b   : > { %p451_p12 = scmp.ne.s32.totalorder %s449_s8, %s450_s18  ;;  %p456_p2 = scmp.lt.s32.totalorder %s454_s11, %s450_s18 }
  0x1c   : > { %247 = vmatpush.msra.mxu0 %v225_v3 }
  0x1d   : > { %p452_p13 = pnand %p451_p12, %p580_p4  ;;  %p457_p3 = por %p456_p2, %p455_p1 }
  0x1e   : > { %265 = vperm.xlu0 %433, %v262_v4   ;;  %248 = vmatpush.msra.mxu0 %v224_v5 }
  0x1f   : > { %p453_p0 = pneg %p452_p13 }
  0x20   : > { %249 = vmatpush.msra.mxu0 %v223_v6 }
  0x21   : > { %p458_p5 = pnand %p457_p3, %p453_p0 }
  0x22   : > { %250 = vmatpush.msra.mxu0 %v222_v7 }
  0x23   : > { %371 = vmatmul.msk.f32.vlgmr.msra.gmra.mxu0 %vm227_vm1, %v221_v8 }
  0x88   : > { %v259_v9 = vpop.permute.xlu0 %258 }
  0x90   : > { %v266_v12 = vpop.permute.xlu0 %265 }
  0xa0   : > { %v252_v10 = vpop.f32.mrf.mxu0 }
  0xa1   : > { %v261_v11 = vmul.f32 %v259_v9, %v252_v10 }
  0xa3   : > { %v268_v13 = vadd.f32 %v266_v12, %v261_v11 }
  0xa5   : > { %v269_v14 = vmax.f32 %v268_v13, 0.0 }
  0xa7   : > { %271 = vst.msk [vmem:[%s212_s30] sm:$0xff] %vm270_vm2, %v269_v14 }
  0xa8   : > { %461 = shalt.err (!%p458_p5)
}
  0xa9   : > { %377 = dma.vmem_to_hbm [thread:$0]  (%p580_p4), %s287_s5, 128, %s289_s6, %s273_s7  }
  0xaa PF: > { %p383_p6 = scmp.ge.s32.totalorder %s512_s20, 2  ;;  %s300_s14 = sand.u32 1, %s492_s15  }
  0xab   : > { %s301_s21 = scalar_lea.sflag [#allocation3], %s300_s14 }
  0xac   : > { %p380_p7 = pnand %p383_p6, %p587_p8 }
  0xae   : > { %p381_p9 = pneg %p380_p7 }
  0xb0   : > { %487 = dma.done.wait (%p381_p9), %s301_s21, 128  }
  0xb1   : > { %489 = vsyncadd (%p381_p9), %s301_s21, 4294967168  ;;  %s17_s20 = sadd.s32 1, %s512_s20   ;;  %s653_s15 = smov %s496_s16 }
  0xb2   : > { %p14_p10 = scmp.ge.s32.totalorder %s17_s20, 4   ;;  %s654_s16 = smov %s500_s17 }
  0xb3   : > { %s655_s17 = smov %s593_s28  ;;  %s656_s18 = smov %s508_s19 }
  0xb4   : > { %s657_s19 = smov %s659_s23  ;;  %16 = sbr.rel (!%p14_p10) target bundleno = 4 (0x4), region = 71 }
  0xb9   :  { %307 = vsyncpa [#allocation3], 1 }
  0xba   :  { %309 = vsyncpa [#allocation3 + $0x1], 1 }

</bundles_post_ra>
